<compile_context>
chip_gen: v6e
topology: v6e:2x2x1
jax: 0.10.0
libtpu: 0.0.40
codegen_flags: <defaults>
</compile_context>

<pallas_src>
import functools

import jax
import jax.numpy as jnp
from jax.experimental import pallas as pl
from jax.experimental.pallas import tpu as pltpu


# ----------------------------------------------------------------------------
# helpers
# ----------------------------------------------------------------------------
def _round_up(x, m):
    return (x + m - 1) // m * m


def _pad128(x):
    return _round_up(x, 128)


def _pad_rows(x, rows_p):
    n = x.shape[0]
    if n == rows_p:
        return x
    pad = jnp.zeros((rows_p - n,) + x.shape[1:], x.dtype)
    return jnp.concatenate([x, pad], axis=0)


def _pad_cols(w, to):
    return jnp.pad(w, ((0, 0), (0, to - w.shape[1])))


# Row tiles are independent -> shard across TensorCores on v7x; no-op on
# v5e/v6e.  32 MiB scoped VMEM is safe on every generation (v7x physical is
# 64 MiB per TC) and far above the ~2-3 MiB working sets used here.
_COMPILER_PARAMS = pltpu.CompilerParams(
    dimension_semantics=("parallel",),
    vmem_limit_bytes=32 * 1024 * 1024,
)

# 1024-row tiles amortize the ~0.35us per-grid-step overhead (v5e/v6e) while
# keeping double-buffered working sets tiny at these lane widths (<=128).
_ROW_TILE = 1024


def _pick_tile(rows, tm=_ROW_TILE):
    """Pick (tile, padded_rows).  Core-aware: keep >=2 grid steps whenever
    possible so the "parallel" row axis can be sharded across both v7x
    TensorCores; harmless on single-TC v5e/v6e."""
    rows = max(int(rows), 1)
    half = _round_up((rows + 1) // 2, 8)
    tm = max(8, min(tm, half))
    return tm, _round_up(rows, tm)


# ----------------------------------------------------------------------------
# Pallas kernels
# ----------------------------------------------------------------------------
def _linear_kernel(x_ref, wt_ref, b_ref, o_ref):
    # bf16 operands on the MXU, f32 accumulate.
    acc = jnp.dot(x_ref[...], wt_ref[...],
                  preferred_element_type=jnp.float32) + b_ref[...]
    o_ref[...] = acc.astype(o_ref.dtype)


def _edge_layer_kernel(xi_ref, xj_ref, ea_ref, ci_ref, cj_ref,
                       wxi_ref, wxj_ref, wea_ref, wrd_ref, eb1_ref,
                       ew2_ref, eb2_ref, cw1_ref, cb1_ref, cw2_ref, cb2_ref,
                       out_ref):
    # ---- coordinate path stays f32 (precision-sensitive) -------------------
    rel = cj_ref[...] - ci_ref[...]                       # coors[row]-coors[col]
    rel_dist = jnp.sum(rel * rel, axis=-1, keepdims=True)  # (tm, 1) f32
    # ---- edge MLP layer 1 (concat-free: weight split per input segment) ----
    h = jnp.dot(xi_ref[...], wxi_ref[...], preferred_element_type=jnp.float32)
    h += jnp.dot(xj_ref[...], wxj_ref[...], preferred_element_type=jnp.float32)
    h += jnp.dot(ea_ref[...], wea_ref[...], preferred_element_type=jnp.float32)
    h += rel_dist * wrd_ref[...]          # (tm,1)x(1,d1p) outer product on VPU
    h += eb1_ref[...]
    h = h * jax.nn.sigmoid(h)             # SiLU (padded lanes stay exactly 0)
    # ---- edge MLP layer 2 + SiLU -------------------------------------------
    m = jnp.dot(h.astype(jnp.bfloat16), ew2_ref[...],
                preferred_element_type=jnp.float32) + eb2_ref[...]
    m = m * jax.nn.sigmoid(m)
    # ---- coord MLP: Linear -> SiLU -> Linear(->1) as cross-lane reduce -----
    c = jnp.dot(m.astype(jnp.bfloat16), cw1_ref[...],
                preferred_element_type=jnp.float32) + cb1_ref[...]
    c = c * jax.nn.sigmoid(c)
    w = jnp.sum(c * cw2_ref[...], axis=-1, keepdims=True) + cb2_ref[0]
    # ---- packed output slab: [m_ij | coor_wij * rel_coors] -----------------
    out_ref[...] = jnp.concatenate([m, w * rel], axis=-1).astype(out_ref.dtype)


def _node_layer_kernel(feats_ref, mi_ref, wf_ref, wm_ref, nb1_ref,
                       nw2_ref, nb2_ref, o_ref):
    feats32 = feats_ref[...]                               # f32 residual base
    h = jnp.dot(feats32.astype(jnp.bfloat16), wf_ref[...],
                preferred_element_type=jnp.float32)
    h += jnp.dot(mi_ref[...], wm_ref[...], preferred_element_type=jnp.float32)
    h += nb1_ref[...]
    h = h * jax.nn.sigmoid(h)
    o = jnp.dot(h.astype(jnp.bfloat16), nw2_ref[...],
                preferred_element_type=jnp.float32) + nb2_ref[...]
    o_ref[...] = (feats32 + o).astype(o_ref.dtype)


# ----------------------------------------------------------------------------
# Pallas wrappers (row-tiled, pipelined)
# ----------------------------------------------------------------------------
def pallas_linear(x, lin, tm=_ROW_TILE):
    """x: (rows, Din); lin = {'wt': (Din, Dout) bf16, 'b': (1, Dout) f32}."""
    rows, din = x.shape
    dout = lin["wt"].shape[1]
    tm, rows_p = _pick_tile(rows, tm)
    xp = _pad_rows(x.astype(jnp.bfloat16), rows_p)

    flops = 2 * rows_p * din * dout
    bytes_acc = rows_p * (din * 2 + dout * 4) + din * dout * 2 + dout * 4

    out = pl.pallas_call(
        _linear_kernel,
        out_shape=jax.ShapeDtypeStruct((rows_p, dout), jnp.float32),
        grid=(rows_p // tm,),
        in_specs=[
            pl.BlockSpec((tm, din), lambda i: (i, 0)),
            pl.BlockSpec((din, dout), lambda i: (0, 0)),
            pl.BlockSpec((1, dout), lambda i: (0, 0)),
        ],
        out_specs=pl.BlockSpec((tm, dout), lambda i: (i, 0)),
        compiler_params=_COMPILER_PARAMS,
        cost_estimate=pl.CostEstimate(flops=int(flops), transcendentals=0,
                                      bytes_accessed=int(bytes_acc)),
    )(xp, lin["wt"], lin["b"])
    return out[:rows]


def fused_edge_layer(p, xi, xj, ea, ci, cj, tm=_ROW_TILE):
    """Edge MLP + coord MLP + coor_wij*rel_coors in one kernel over edge tiles.

    Returns a packed (E, m_dim+3) f32 slab: [:, :m_dim] = m_ij,
    [:, m_dim:] = coor_wij * rel_coors.
    """
    e, fdim = xi.shape
    adim = ea.shape[1]
    d1p = p["e1_xi"].shape[1]
    m_dim = p["e2_w"].shape[1]
    d3p = p["c1_w"].shape[1]
    out_w = m_dim + 3
    tm, e_p = _pick_tile(e, tm)
    xi_p = _pad_rows(xi, e_p)
    xj_p = _pad_rows(xj, e_p)
    ea_p = _pad_rows(ea, e_p)
    ci_p = _pad_rows(ci, e_p)
    cj_p = _pad_rows(cj, e_p)

    flops = 2 * e_p * ((2 * fdim + adim) * d1p + d1p * m_dim + m_dim * d3p) \
        + e_p * (2 * d1p + 2 * d3p + 24)
    trans = e_p * (d1p + m_dim + d3p)
    bytes_acc = (e_p * ((2 * fdim + adim) * 2 + 6 * 4 + out_w * 4)
                 + 2 * ((2 * fdim + adim) * d1p + d1p * m_dim + m_dim * d3p)
                 + 4 * (3 * d1p + m_dim + 2 * d3p + 1))

    out = pl.pallas_call(
        _edge_layer_kernel,
        out_shape=jax.ShapeDtypeStruct((e_p, out_w), jnp.float32),
        grid=(e_p // tm,),
        in_specs=[
            pl.BlockSpec((tm, fdim), lambda i: (i, 0)),     # x_i   (bf16)
            pl.BlockSpec((tm, fdim), lambda i: (i, 0)),     # x_j   (bf16)
            pl.BlockSpec((tm, adim), lambda i: (i, 0)),     # e_attr(bf16)
            pl.BlockSpec((tm, 3), lambda i: (i, 0)),        # coors[col] f32
            pl.BlockSpec((tm, 3), lambda i: (i, 0)),        # coors[row] f32
            pl.BlockSpec((fdim, d1p), lambda i: (0, 0)),
            pl.BlockSpec((fdim, d1p), lambda i: (0, 0)),
            pl.BlockSpec((adim, d1p), lambda i: (0, 0)),
            pl.BlockSpec((1, d1p), lambda i: (0, 0)),
            pl.BlockSpec((1, d1p), lambda i: (0, 0)),
            pl.BlockSpec((d1p, m_dim), lambda i: (0, 0)),
            pl.BlockSpec((1, m_dim), lambda i: (0, 0)),
            pl.BlockSpec((m_dim, d3p), lambda i: (0, 0)),
            pl.BlockSpec((1, d3p), lambda i: (0, 0)),
            pl.BlockSpec((1, d3p), lambda i: (0, 0)),
            pl.BlockSpec(memory_space=pltpu.MemorySpace.SMEM),  # scalar bias
        ],
        out_specs=pl.BlockSpec((tm, out_w), lambda i: (i, 0)),
        compiler_params=_COMPILER_PARAMS,
        cost_estimate=pl.CostEstimate(flops=int(flops),
                                      transcendentals=int(trans),
                                      bytes_accessed=int(bytes_acc)),
    )(xi_p, xj_p, ea_p, ci_p, cj_p,
      p["e1_xi"], p["e1_xj"], p["e1_ea"], p["e1_rd"], p["e1_b"],
      p["e2_w"], p["e2_b"], p["c1_w"], p["c1_b"], p["c2_w"], p["c2_b"])
    return out[:e]


def fused_node_layer(p, feats, mi_bf16, tm=_ROW_TILE):
    """Node MLP (split-weight Linear -> SiLU -> Linear) + feature residual."""
    n, fdim = feats.shape
    m_dim = mi_bf16.shape[1]
    dn1p = p["n1_f"].shape[1]
    tm, n_p = _pick_tile(n, tm)
    feats_p = _pad_rows(feats.astype(jnp.float32), n_p)
    mi_p = _pad_rows(mi_bf16, n_p)

    flops = 2 * n_p * ((fdim + m_dim) * dn1p + dn1p * fdim)
    trans = n_p * dn1p
    bytes_acc = (n_p * (fdim * 4 + m_dim * 2 + fdim * 4)
                 + 2 * ((fdim + m_dim) * dn1p + dn1p * fdim)
                 + 4 * (dn1p + fdim))

    out = pl.pallas_call(
        _node_layer_kernel,
        out_shape=jax.ShapeDtypeStruct((n_p, fdim), jnp.float32),
        grid=(n_p // tm,),
        in_specs=[
            pl.BlockSpec((tm, fdim), lambda i: (i, 0)),     # feats f32
            pl.BlockSpec((tm, m_dim), lambda i: (i, 0)),    # m_i   bf16
            pl.BlockSpec((fdim, dn1p), lambda i: (0, 0)),
            pl.BlockSpec((m_dim, dn1p), lambda i: (0, 0)),
            pl.BlockSpec((1, dn1p), lambda i: (0, 0)),
            pl.BlockSpec((dn1p, fdim), lambda i: (0, 0)),
            pl.BlockSpec((1, fdim), lambda i: (0, 0)),
        ],
        out_specs=pl.BlockSpec((tm, fdim), lambda i: (i, 0)),
        compiler_params=_COMPILER_PARAMS,
        cost_estimate=pl.CostEstimate(flops=int(flops),
                                      transcendentals=int(trans),
                                      bytes_accessed=int(bytes_acc)),
    )(feats_p, mi_p, p["n1_f"], p["n1_m"], p["n1_b"], p["n2_w"], p["n2_b"])
    return out[:n]


# ----------------------------------------------------------------------------
# Parameter initialization (transpose / split / pad / cast to bf16 ONCE here)
# ----------------------------------------------------------------------------
def _xavier_linear(key, out_dim, in_dim):
    kw, kb = jax.random.split(key)
    a = jnp.sqrt(6.0 / (in_dim + out_dim))
    w = jax.random.uniform(kw, (out_dim, in_dim), jnp.float32, -a, a)
    bb = 1.0 / jnp.sqrt(in_dim)
    b = jax.random.uniform(kb, (out_dim,), jnp.float32, -bb, bb)
    return w, b


def _prep_linear(w, b, dtype=jnp.bfloat16):
    return {"wt": jnp.asarray(w.T, dtype),
            "b": jnp.asarray(b, jnp.float32).reshape(1, -1)}


# synthetic feature splits (original repo helpers were not provided)
def get_node_feature_dims():
    return [3, 11, 5]


def get_edge_feature_dims():
    return [2, 2]


def _init_encoder(key, emb_dim, dims):
    keys = jax.random.split(key, len(dims))
    ws, bs = zip(*[_xavier_linear(k, emb_dim, d) for k, d in zip(keys, dims)])
    # sum_i Linear_i(x[:, off_i:off_i+d_i]) == one fused linear on the concat
    w_full = jnp.concatenate(ws, axis=1)
    b_full = functools.reduce(lambda a, b: a + b, bs)
    return _prep_linear(w_full, b_full)


def init_egnn_sparse(key, feats_dim, m_dim, edge_attr_dim):
    fdim, adim = feats_dim, edge_attr_dim
    edge_in = 2 * fdim + adim + 1
    d1, d1p = edge_in * 2, _pad128(edge_in * 2)
    d3, d3p = m_dim * 4, _pad128(m_dim * 4)
    dn1, dn1p = feats_dim * 2, _pad128(feats_dim * 2)
    ks = jax.random.split(key, 6)
    p = {}
    # edge MLP layer 1: split by input segment [x_i | x_j | edge_attr | dist],
    # output (hidden) zero-padded to d1p lanes.
    w1, b1 = _xavier_linear(ks[0], d1, edge_in)
    w1t = w1.T
    p["e1_xi"] = _pad_cols(w1t[:fdim], d1p).astype(jnp.bfloat16)
    p["e1_xj"] = _pad_cols(w1t[fdim:2 * fdim], d1p).astype(jnp.bfloat16)
    p["e1_ea"] = _pad_cols(w1t[2 * fdim:2 * fdim + adim], d1p).astype(jnp.bfloat16)
    p["e1_rd"] = _pad_cols(w1t[2 * fdim + adim:], d1p).astype(jnp.float32)  # f32 row
    p["e1_b"] = jnp.pad(b1, (0, d1p - d1)).reshape(1, -1).astype(jnp.float32)
    # edge MLP layer 2 (K padded to d1p with zero rows)
    w2, b2 = _xavier_linear(ks[1], m_dim, d1)
    p["e2_w"] = jnp.pad(w2.T, ((0, d1p - d1), (0, 0))).astype(jnp.bfloat16)
    p["e2_b"] = b2.reshape(1, -1).astype(jnp.float32)
    # coord MLP layer 1 (hidden padded to d3p lanes)
    w3, b3 = _xavier_linear(ks[2], d3, m_dim)
    p["c1_w"] = _pad_cols(w3.T, d3p).astype(jnp.bfloat16)
    p["c1_b"] = jnp.pad(b3, (0, d3p - d3)).reshape(1, -1).astype(jnp.float32)
    # coord MLP layer 2: Dout=1 as an f32 row vector (in-kernel XLU reduce);
    # its scalar bias goes to SMEM.
    w4, b4 = _xavier_linear(ks[3], 1, d3)
    p["c2_w"] = jnp.pad(w4.reshape(1, -1), ((0, 0), (0, d3p - d3))).astype(jnp.float32)
    p["c2_b"] = b4.reshape(-1).astype(jnp.float32)                    # shape (1,)
    # node MLP layer 1: split by [feats | m_i], hidden padded to dn1p lanes
    w5, b5 = _xavier_linear(ks[4], dn1, feats_dim + m_dim)
    w5t = w5.T
    p["n1_f"] = _pad_cols(w5t[:fdim], dn1p).astype(jnp.bfloat16)
    p["n1_m"] = _pad_cols(w5t[fdim:], dn1p).astype(jnp.bfloat16)
    p["n1_b"] = jnp.pad(b5, (0, dn1p - dn1)).reshape(1, -1).astype(jnp.float32)
    # node MLP layer 2 (K padded to dn1p with zero rows)
    w6, b6 = _xavier_linear(ks[5], feats_dim, dn1)
    p["n2_w"] = jnp.pad(w6.T, ((0, dn1p - dn1), (0, 0))).astype(jnp.bfloat16)
    p["n2_b"] = b6.reshape(1, -1).astype(jnp.float32)
    return p


def init_egnn(key, config, input_dim, out_dim):
    n_layers = int(config["n_layers"])
    m_dim = int(config["hidden_channels"])
    edge_attr_dim = int(config["edge_attr_dim"])
    keys = jax.random.split(key, n_layers + 3)
    params = {
        "layers": [init_egnn_sparse(keys[i], input_dim, m_dim, edge_attr_dim)
                   for i in range(n_layers)],
        "lin": _prep_linear(*_xavier_linear(keys[n_layers], out_dim, input_dim)),
    }
    if config["embedding"]:
        params["node_enc"] = _init_encoder(keys[n_layers + 1], input_dim,
                                           get_node_feature_dims())
        params["edge_enc"] = _init_encoder(keys[n_layers + 2], input_dim,
                                           get_edge_feature_dims())
    return params


# ----------------------------------------------------------------------------
# Forward passes
# ----------------------------------------------------------------------------
def egnn_sparse_forward(p, x, row, col, edge_attr_bf16):
    """x: (N, 3+F); row/col: edges sorted by col.  Returns (N, 3+F)."""
    n = x.shape[0]
    coors, feats = x[:, :3], x[:, 3:]
    # TODO(synk): these gathers remain XLA glue (bf16 halves gather bytes);
    # folding them into the edge kernel via a manual DMA gather is future work.
    feats_bf = feats.astype(jnp.bfloat16)
    xi = jnp.take(feats_bf, col, axis=0)
    xj = jnp.take(feats_bf, row, axis=0)
    ci = jnp.take(coors, col, axis=0)
    cj = jnp.take(coors, row, axis=0)

    # fused: edge MLP + coord MLP + coor_wij*rel_coors -> packed (E, m_dim+3)
    edge_out = fused_edge_layer(p, xi, xj, edge_attr_bf16, ci, cj)

    # single segment-sum over the packed slab (edges pre-sorted by target)
    m_dim = p["e2_b"].shape[1]
    agg = jax.ops.segment_sum(edge_out, col, num_segments=n,
                              indices_are_sorted=True)
    m_i = agg[:, :m_dim]
    coors_out = coors + agg[:, m_dim:]

    # fused: node MLP (split weights -> no concat round-trip) + residual
    hidden_out = fused_node_layer(p, feats, m_i.astype(jnp.bfloat16))
    return jnp.concatenate([coors_out, hidden_out], axis=-1)


def egnn_forward(params, config, x, pos, edge_index, edge_attr, mu_r_norm):
    input_x = jnp.concatenate([pos, x, mu_r_norm], axis=1)
    if config["embedding"]:
        input_x = pallas_linear(input_x, params["node_enc"])
        edge_attr = pallas_linear(edge_attr, params["edge_enc"])
    # Sort edges by target node ONCE: sorted segment-sum aggregation and more
    # coherent gathers for every layer.
    row, col = edge_index[0], edge_index[1]          # source j, target i
    order = jnp.argsort(col)
    row = jnp.take(row, order)
    col = jnp.take(col, order)
    edge_attr_bf = jnp.take(edge_attr, order, axis=0).astype(jnp.bfloat16)
    for lp in params["layers"]:
        h = egnn_sparse_forward(lp, input_x, row, col, edge_attr_bf)
        input_x = input_x + h if config["residual"] else h
    xf = input_x[:, 3:]
    # droplayer = Dropout(int(0)) -> identity
    return pallas_linear(xf, params["lin"])


# ----------------------------------------------------------------------------
if __name__ == "__main__":
    key = jax.random.PRNGKey(0)
    kp, kx, kpos, kmu, kea, kei = jax.random.split(key, 6)

    N, E = 32, 64
    dx, dmu = 11, 5
    input_dim = dx + dmu          # 16 : feature dim seen by EGNN_Sparse / final lin
    out_dim = 8
    config = {
        "hidden_channels": 32,    # m_dim
        "edge_attr_dim": 4,
        "dropout": 0,
        "mlp_num": 1,
        "n_layers": 2,
        "embedding": False,       # see TODO(synk) note at top
        "residual": True,
    }

    params = init_egnn(kp, config, input_dim, out_dim)

    x = jax.random.normal(kx, (N, dx), jnp.float32)
    pos = jax.random.normal(kpos, (N, 3), jnp.float32)
    mu_r_norm = jax.random.normal(kmu, (N, dmu), jnp.float32)
    edge_attr = jax.random.normal(kea, (E, int(config["edge_attr_dim"])), jnp.float32)
    edge_index = jax.random.randint(kei, (2, E), 0, N, jnp.int32)

    fwd = jax.jit(functools.partial(egnn_forward, params, config))
    out = fwd(x, pos, edge_index, edge_attr, mu_r_norm)
    out = jax.block_until_ready(out)
    assert out.shape == (N, out_dim), out.shape
    assert jnp.all(jnp.isfinite(out))
    print("KERNEL_OK")
</pallas_src>

<mosaic_0001>
module attributes {stable_mosaic.version = 11 : i64} {
  func.func @_edge_layer_kernel(%arg0: i32, %arg1: memref<32x16xbf16, #tpu.memory_space<vmem>>, %arg2: memref<32x16xbf16, #tpu.memory_space<vmem>>, %arg3: memref<32x4xbf16, #tpu.memory_space<vmem>>, %arg4: memref<32x3xf32, #tpu.memory_space<vmem>>, %arg5: memref<32x3xf32, #tpu.memory_space<vmem>>, %arg6: memref<16x128xbf16, #tpu.memory_space<vmem>>, %arg7: memref<16x128xbf16, #tpu.memory_space<vmem>>, %arg8: memref<4x128xbf16, #tpu.memory_space<vmem>>, %arg9: memref<1x128xf32, #tpu.memory_space<vmem>>, %arg10: memref<1x128xf32, #tpu.memory_space<vmem>>, %arg11: memref<128x32xbf16, #tpu.memory_space<vmem>>, %arg12: memref<1x32xf32, #tpu.memory_space<vmem>>, %arg13: memref<32x128xbf16, #tpu.memory_space<vmem>>, %arg14: memref<1x128xf32, #tpu.memory_space<vmem>>, %arg15: memref<1x128xf32, #tpu.memory_space<vmem>>, %arg16: memref<1xf32, #tpu.memory_space<smem>>, %arg17: memref<32x35xf32, #tpu.memory_space<vmem>>) attributes {dimension_semantics = [#tpu.dimension_semantics<parallel>], iteration_bounds = array<i64: 2>, scalar_prefetch = 0 : i64, scratch_operands = 0 : i64, tpu.core_type = #tpu.core_type<tc>, window_params = [{transform_indices = @transform_0, window_bounds = array<i64: 32, 16>}, {transform_indices = @transform_1, window_bounds = array<i64: 32, 16>}, {transform_indices = @transform_2, window_bounds = array<i64: 32, 4>}, {transform_indices = @transform_3, window_bounds = array<i64: 32, 3>}, {transform_indices = @transform_4, window_bounds = array<i64: 32, 3>}, {pipeline_mode = #tpu.pipeline_mode<synchronous>, transform_indices = @transform_5, window_bounds = array<i64: 16, 128>}, {pipeline_mode = #tpu.pipeline_mode<synchronous>, transform_indices = @transform_6, window_bounds = array<i64: 16, 128>}, {pipeline_mode = #tpu.pipeline_mode<synchronous>, transform_indices = @transform_7, window_bounds = array<i64: 4, 128>}, {pipeline_mode = #tpu.pipeline_mode<synchronous>, transform_indices = @transform_8, window_bounds = array<i64: 1, 128>}, {pipeline_mode = #tpu.pipeline_mode<synchronous>, transform_indices = @transform_9, window_bounds = array<i64: 1, 128>}, {pipeline_mode = #tpu.pipeline_mode<synchronous>, transform_indices = @transform_10, window_bounds = array<i64: 128, 32>}, {pipeline_mode = #tpu.pipeline_mode<synchronous>, transform_indices = @transform_11, window_bounds = array<i64: 1, 32>}, {pipeline_mode = #tpu.pipeline_mode<synchronous>, transform_indices = @transform_12, window_bounds = array<i64: 32, 128>}, {pipeline_mode = #tpu.pipeline_mode<synchronous>, transform_indices = @transform_13, window_bounds = array<i64: 1, 128>}, {pipeline_mode = #tpu.pipeline_mode<synchronous>, transform_indices = @transform_14, window_bounds = array<i64: 1, 128>}, {transform_indices = @transform_15, window_bounds = array<i64: 1>}, {transform_indices = @transform_16, window_bounds = array<i64: 32, 35>}]} {
    %c0 = arith.constant 0 : index
    %c0_0 = arith.constant 0 : index
    %0 = vector.load %arg5[%c0, %c0_0] : memref<32x3xf32, #tpu.memory_space<vmem>>, vector<32x3xf32>
    %c0_1 = arith.constant 0 : index
    %c0_2 = arith.constant 0 : index
    %1 = vector.load %arg4[%c0_1, %c0_2] : memref<32x3xf32, #tpu.memory_space<vmem>>, vector<32x3xf32>
    %2 = arith.subf %0, %1 : vector<32x3xf32>
    %3 = arith.mulf %2, %2 : vector<32x3xf32>
    %cst = arith.constant dense<0.000000e+00> : vector<32xf32>
    %4 = vector.multi_reduction <add>, %3, %cst [1] : vector<32x3xf32> to vector<32xf32>
    %5 = vector.shape_cast %4 : vector<32xf32> to vector<32x1xf32>
    %c0_3 = arith.constant 0 : index
    %c0_4 = arith.constant 0 : index
    %6 = vector.load %arg1[%c0_3, %c0_4] : memref<32x16xbf16, #tpu.memory_space<vmem>>, vector<32x16xbf16>
    %c0_5 = arith.constant 0 : index
    %c0_6 = arith.constant 0 : index
    %7 = vector.load %arg6[%c0_5, %c0_6] : memref<16x128xbf16, #tpu.memory_space<vmem>>, vector<16x128xbf16>
    %cst_7 = arith.constant dense<0.000000e+00> : vector<32x128xf32>
    %8 = tpu.matmul %6, %7, %cst_7 {dimension_numbers = #tpu.dot_dimension_numbers<[1], [0], [0], [1], [0, 0, 1, 1], [], []>} : vector<32x16xbf16>, vector<16x128xbf16>, vector<32x128xf32> -> vector<32x128xf32>
    %c0_8 = arith.constant 0 : index
    %c0_9 = arith.constant 0 : index
    %9 = vector.load %arg2[%c0_8, %c0_9] : memref<32x16xbf16, #tpu.memory_space<vmem>>, vector<32x16xbf16>
    %c0_10 = arith.constant 0 : index
    %c0_11 = arith.constant 0 : index
    %10 = vector.load %arg7[%c0_10, %c0_11] : memref<16x128xbf16, #tpu.memory_space<vmem>>, vector<16x128xbf16>
    %cst_12 = arith.constant dense<0.000000e+00> : vector<32x128xf32>
    %11 = tpu.matmul %9, %10, %cst_12 {dimension_numbers = #tpu.dot_dimension_numbers<[1], [0], [0], [1], [0, 0, 1, 1], [], []>} : vector<32x16xbf16>, vector<16x128xbf16>, vector<32x128xf32> -> vector<32x128xf32>
    %12 = arith.addf %8, %11 : vector<32x128xf32>
    %c0_13 = arith.constant 0 : index
    %c0_14 = arith.constant 0 : index
    %13 = vector.load %arg3[%c0_13, %c0_14] : memref<32x4xbf16, #tpu.memory_space<vmem>>, vector<32x4xbf16>
    %c0_15 = arith.constant 0 : index
    %c0_16 = arith.constant 0 : index
    %14 = vector.load %arg8[%c0_15, %c0_16] : memref<4x128xbf16, #tpu.memory_space<vmem>>, vector<4x128xbf16>
    %cst_17 = arith.constant dense<0.000000e+00> : vector<32x128xf32>
    %15 = tpu.matmul %13, %14, %cst_17 {dimension_numbers = #tpu.dot_dimension_numbers<[1], [0], [0], [1], [0, 0, 1, 1], [], []>} : vector<32x4xbf16>, vector<4x128xbf16>, vector<32x128xf32> -> vector<32x128xf32>
    %16 = arith.addf %12, %15 : vector<32x128xf32>
    %c0_18 = arith.constant 0 : index
    %c0_19 = arith.constant 0 : index
    %17 = vector.load %arg9[%c0_18, %c0_19] : memref<1x128xf32, #tpu.memory_space<vmem>>, vector<1x128xf32>
    %18 = vector.broadcast %5 : vector<32x1xf32> to vector<32x128xf32>
    %19 = vector.broadcast %17 : vector<1x128xf32> to vector<32x128xf32>
    %20 = arith.mulf %18, %19 : vector<32x128xf32>
    %21 = arith.addf %16, %20 : vector<32x128xf32>
    %c0_20 = arith.constant 0 : index
    %c0_21 = arith.constant 0 : index
    %22 = vector.load %arg10[%c0_20, %c0_21] : memref<1x128xf32, #tpu.memory_space<vmem>>, vector<1x128xf32>
    %23 = vector.broadcast %22 : vector<1x128xf32> to vector<32x128xf32>
    %24 = arith.addf %21, %23 : vector<32x128xf32>
    %25 = arith.negf %24 : vector<32x128xf32>
    %26 = math.exp %25 : vector<32x128xf32>
    %cst_22 = arith.constant 1.000000e+00 : f32
    %27 = vector.broadcast %cst_22 : f32 to vector<32x128xf32>
    %28 = arith.addf %27, %26 : vector<32x128xf32>
    %29 = arith.divf %27, %28 : vector<32x128xf32>
    %30 = arith.mulf %24, %29 : vector<32x128xf32>
    %31 = arith.truncf %30 : vector<32x128xf32> to vector<32x128xbf16>
    %c0_23 = arith.constant 0 : index
    %c0_24 = arith.constant 0 : index
    %32 = vector.load %arg11[%c0_23, %c0_24] : memref<128x32xbf16, #tpu.memory_space<vmem>>, vector<128x32xbf16>
    %cst_25 = arith.constant dense<0.000000e+00> : vector<32x32xf32>
    %33 = tpu.matmul %31, %32, %cst_25 {dimension_numbers = #tpu.dot_dimension_numbers<[1], [0], [0], [1], [0, 0, 1, 1], [], []>} : vector<32x128xbf16>, vector<128x32xbf16>, vector<32x32xf32> -> vector<32x32xf32>
    %c0_26 = arith.constant 0 : index
    %c0_27 = arith.constant 0 : index
    %34 = vector.load %arg12[%c0_26, %c0_27] : memref<1x32xf32, #tpu.memory_space<vmem>>, vector<1x32xf32>
    %35 = vector.broadcast %34 : vector<1x32xf32> to vector<32x32xf32>
    %36 = arith.addf %33, %35 : vector<32x32xf32>
    %37 = arith.negf %36 : vector<32x32xf32>
    %38 = math.exp %37 : vector<32x32xf32>
    %cst_28 = arith.constant 1.000000e+00 : f32
    %39 = vector.broadcast %cst_28 : f32 to vector<32x32xf32>
    %40 = arith.addf %39, %38 : vector<32x32xf32>
    %41 = arith.divf %39, %40 : vector<32x32xf32>
    %42 = arith.mulf %36, %41 : vector<32x32xf32>
    %43 = arith.truncf %42 : vector<32x32xf32> to vector<32x32xbf16>
    %c0_29 = arith.constant 0 : index
    %c0_30 = arith.constant 0 : index
    %44 = vector.load %arg13[%c0_29, %c0_30] : memref<32x128xbf16, #tpu.memory_space<vmem>>, vector<32x128xbf16>
    %cst_31 = arith.constant dense<0.000000e+00> : vector<32x128xf32>
    %45 = tpu.matmul %43, %44, %cst_31 {dimension_numbers = #tpu.dot_dimension_numbers<[1], [0], [0], [1], [0, 0, 1, 1], [], []>} : vector<32x32xbf16>, vector<32x128xbf16>, vector<32x128xf32> -> vector<32x128xf32>
    %c0_32 = arith.constant 0 : index
    %c0_33 = arith.constant 0 : index
    %46 = vector.load %arg14[%c0_32, %c0_33] : memref<1x128xf32, #tpu.memory_space<vmem>>, vector<1x128xf32>
    %47 = vector.broadcast %46 : vector<1x128xf32> to vector<32x128xf32>
    %48 = arith.addf %45, %47 : vector<32x128xf32>
    %49 = arith.negf %48 : vector<32x128xf32>
    %50 = math.exp %49 : vector<32x128xf32>
    %cst_34 = arith.constant 1.000000e+00 : f32
    %51 = vector.broadcast %cst_34 : f32 to vector<32x128xf32>
    %52 = arith.addf %51, %50 : vector<32x128xf32>
    %53 = arith.divf %51, %52 : vector<32x128xf32>
    %54 = arith.mulf %48, %53 : vector<32x128xf32>
    %c0_35 = arith.constant 0 : index
    %c0_36 = arith.constant 0 : index
    %55 = vector.load %arg15[%c0_35, %c0_36] : memref<1x128xf32, #tpu.memory_space<vmem>>, vector<1x128xf32>
    %56 = vector.broadcast %55 : vector<1x128xf32> to vector<32x128xf32>
    %57 = arith.mulf %54, %56 : vector<32x128xf32>
    %cst_37 = arith.constant dense<0.000000e+00> : vector<32xf32>
    %58 = vector.multi_reduction <add>, %57, %cst_37 [1] : vector<32x128xf32> to vector<32xf32>
    %59 = vector.shape_cast %58 : vector<32xf32> to vector<32x1xf32>
    %c0_38 = arith.constant 0 : index
    %60 = memref.load %arg16[%c0_38] : memref<1xf32, #tpu.memory_space<smem>>
    %61 = vector.broadcast %60 : f32 to vector<32x1xf32>
    %62 = arith.addf %59, %61 : vector<32x1xf32>
    %63 = vector.broadcast %62 : vector<32x1xf32> to vector<32x3xf32>
    %64 = arith.mulf %63, %2 : vector<32x3xf32>
    %65 = tpu.concatenate %42, %64 in 1 : vector<32x32xf32>, vector<32x3xf32> -> vector<32x35xf32>
    %c0_39 = arith.constant 0 : index
    %c0_40 = arith.constant 0 : index
    %66 = vector.load %arg17[%c0_39, %c0_40] : memref<32x35xf32, #tpu.memory_space<vmem>>, vector<32x35xf32>
    tpu.vector_store %arg17[%c0_39, %c0_40], %65 {strides = array<i32>} : memref<32x35xf32, #tpu.memory_space<vmem>>, vector<32x35xf32>,
    return
  }
  func.func @transform_0(%arg0: i32) -> (i32, i32) {
    %c0_i32 = arith.constant 0 : i32
    %c0_i32_0 = arith.constant 0 : i32
    return %arg0, %c0_i32 : i32, i32
  }
  func.func @transform_1(%arg0: i32) -> (i32, i32) {
    %c0_i32 = arith.constant 0 : i32
    %c0_i32_0 = arith.constant 0 : i32
    return %arg0, %c0_i32 : i32, i32
  }
  func.func @transform_2(%arg0: i32) -> (i32, i32) {
    %c0_i32 = arith.constant 0 : i32
    %c0_i32_0 = arith.constant 0 : i32
    return %arg0, %c0_i32 : i32, i32
  }
  func.func @transform_3(%arg0: i32) -> (i32, i32) {
    %c0_i32 = arith.constant 0 : i32
    %c0_i32_0 = arith.constant 0 : i32
    return %arg0, %c0_i32 : i32, i32
  }
  func.func @transform_4(%arg0: i32) -> (i32, i32) {
    %c0_i32 = arith.constant 0 : i32
    %c0_i32_0 = arith.constant 0 : i32
    return %arg0, %c0_i32 : i32, i32
  }
  func.func @transform_5(%arg0: i32) -> (i32, i32) {
    %c0_i32 = arith.constant 0 : i32
    %c0_i32_0 = arith.constant 0 : i32
    %c0_i32_1 = arith.constant 0 : i32
    return %c0_i32, %c0_i32_0 : i32, i32
  }
  func.func @transform_6(%arg0: i32) -> (i32, i32) {
    %c0_i32 = arith.constant 0 : i32
    %c0_i32_0 = arith.constant 0 : i32
    %c0_i32_1 = arith.constant 0 : i32
    return %c0_i32, %c0_i32_0 : i32, i32
  }
  func.func @transform_7(%arg0: i32) -> (i32, i32) {
    %c0_i32 = arith.constant 0 : i32
    %c0_i32_0 = arith.constant 0 : i32
    %c0_i32_1 = arith.constant 0 : i32
    return %c0_i32, %c0_i32_0 : i32, i32
  }
  func.func @transform_8(%arg0: i32) -> (i32, i32) {
    %c0_i32 = arith.constant 0 : i32
    %c0_i32_0 = arith.constant 0 : i32
    %c0_i32_1 = arith.constant 0 : i32
    return %c0_i32, %c0_i32_0 : i32, i32
  }
  func.func @transform_9(%arg0: i32) -> (i32, i32) {
    %c0_i32 = arith.constant 0 : i32
    %c0_i32_0 = arith.constant 0 : i32
    %c0_i32_1 = arith.constant 0 : i32
    return %c0_i32, %c0_i32_0 : i32, i32
  }
  func.func @transform_10(%arg0: i32) -> (i32, i32) {
    %c0_i32 = arith.constant 0 : i32
    %c0_i32_0 = arith.constant 0 : i32
    %c0_i32_1 = arith.constant 0 : i32
    return %c0_i32, %c0_i32_0 : i32, i32
  }
  func.func @transform_11(%arg0: i32) -> (i32, i32) {
    %c0_i32 = arith.constant 0 : i32
    %c0_i32_0 = arith.constant 0 : i32
    %c0_i32_1 = arith.constant 0 : i32
    return %c0_i32, %c0_i32_0 : i32, i32
  }
  func.func @transform_12(%arg0: i32) -> (i32, i32) {
    %c0_i32 = arith.constant 0 : i32
    %c0_i32_0 = arith.constant 0 : i32
    %c0_i32_1 = arith.constant 0 : i32
    return %c0_i32, %c0_i32_0 : i32, i32
  }
  func.func @transform_13(%arg0: i32) -> (i32, i32) {
    %c0_i32 = arith.constant 0 : i32
    %c0_i32_0 = arith.constant 0 : i32
    %c0_i32_1 = arith.constant 0 : i32
    return %c0_i32, %c0_i32_0 : i32, i32
  }
  func.func @transform_14(%arg0: i32) -> (i32, i32) {
    %c0_i32 = arith.constant 0 : i32
    %c0_i32_0 = arith.constant 0 : i32
    %c0_i32_1 = arith.constant 0 : i32
    return %c0_i32, %c0_i32_0 : i32, i32
  }
  func.func @transform_15(%arg0: i32) -> i32 {
    %c0_i32 = arith.constant 0 : i32
    %c0_i32_0 = arith.constant 0 : i32
    return %c0_i32 : i32
  }
  func.func @transform_16(%arg0: i32) -> (i32, i32) {
    %c0_i32 = arith.constant 0 : i32
    %c0_i32_0 = arith.constant 0 : i32
    return %arg0, %c0_i32 : i32, i32
  }
}

module attributes {stable_mosaic.version = 11 : i64} {
  func.func @_node_layer_kernel(%arg0: i32, %arg1: memref<16x16xf32, #tpu.memory_space<vmem>>, %arg2: memref<16x32xbf16, #tpu.memory_space<vmem>>, %arg3: memref<16x128xbf16, #tpu.memory_space<vmem>>, %arg4: memref<32x128xbf16, #tpu.memory_space<vmem>>, %arg5: memref<1x128xf32, #tpu.memory_space<vmem>>, %arg6: memref<128x16xbf16, #tpu.memory_space<vmem>>, %arg7: memref<1x16xf32, #tpu.memory_space<vmem>>, %arg8: memref<16x16xf32, #tpu.memory_space<vmem>>) attributes {dimension_semantics = [#tpu.dimension_semantics<parallel>], iteration_bounds = array<i64: 2>, scalar_prefetch = 0 : i64, scratch_operands = 0 : i64, tpu.core_type = #tpu.core_type<tc>, window_params = [{transform_indices = @transform_0, window_bounds = array<i64: 16, 16>}, {transform_indices = @transform_1, window_bounds = array<i64: 16, 32>}, {pipeline_mode = #tpu.pipeline_mode<synchronous>, transform_indices = @transform_2, window_bounds = array<i64: 16, 128>}, {pipeline_mode = #tpu.pipeline_mode<synchronous>, transform_indices = @transform_3, window_bounds = array<i64: 32, 128>}, {pipeline_mode = #tpu.pipeline_mode<synchronous>, transform_indices = @transform_4, window_bounds = array<i64: 1, 128>}, {pipeline_mode = #tpu.pipeline_mode<synchronous>, transform_indices = @transform_5, window_bounds = array<i64: 128, 16>}, {pipeline_mode = #tpu.pipeline_mode<synchronous>, transform_indices = @transform_6, window_bounds = array<i64: 1, 16>}, {transform_indices = @transform_7, window_bounds = array<i64: 16, 16>}]} {
    %c0 = arith.constant 0 : index
    %c0_0 = arith.constant 0 : index
    %0 = vector.load %arg1[%c0, %c0_0] : memref<16x16xf32, #tpu.memory_space<vmem>>, vector<16x16xf32>
    %1 = arith.truncf %0 : vector<16x16xf32> to vector<16x16xbf16>
    %c0_1 = arith.constant 0 : index
    %c0_2 = arith.constant 0 : index
    %2 = vector.load %arg3[%c0_1, %c0_2] : memref<16x128xbf16, #tpu.memory_space<vmem>>, vector<16x128xbf16>
    %cst = arith.constant dense<0.000000e+00> : vector<16x128xf32>
    %3 = tpu.matmul %1, %2, %cst {dimension_numbers = #tpu.dot_dimension_numbers<[1], [0], [0], [1], [0, 0, 1, 1], [], []>} : vector<16x16xbf16>, vector<16x128xbf16>, vector<16x128xf32> -> vector<16x128xf32>
    %c0_3 = arith.constant 0 : index
    %c0_4 = arith.constant 0 : index
    %4 = vector.load %arg2[%c0_3, %c0_4] : memref<16x32xbf16, #tpu.memory_space<vmem>>, vector<16x32xbf16>
    %c0_5 = arith.constant 0 : index
    %c0_6 = arith.constant 0 : index
    %5 = vector.load %arg4[%c0_5, %c0_6] : memref<32x128xbf16, #tpu.memory_space<vmem>>, vector<32x128xbf16>
    %cst_7 = arith.constant dense<0.000000e+00> : vector<16x128xf32>
    %6 = tpu.matmul %4, %5, %cst_7 {dimension_numbers = #tpu.dot_dimension_numbers<[1], [0], [0], [1], [0, 0, 1, 1], [], []>} : vector<16x32xbf16>, vector<32x128xbf16>, vector<16x128xf32> -> vector<16x128xf32>
    %7 = arith.addf %3, %6 : vector<16x128xf32>
    %c0_8 = arith.constant 0 : index
    %c0_9 = arith.constant 0 : index
    %8 = vector.load %arg5[%c0_8, %c0_9] : memref<1x128xf32, #tpu.memory_space<vmem>>, vector<1x128xf32>
    %9 = vector.broadcast %8 : vector<1x128xf32> to vector<16x128xf32>
    %10 = arith.addf %7, %9 : vector<16x128xf32>
    %11 = arith.negf %10 : vector<16x128xf32>
    %12 = math.exp %11 : vector<16x128xf32>
    %cst_10 = arith.constant 1.000000e+00 : f32
    %13 = vector.broadcast %cst_10 : f32 to vector<16x128xf32>
    %14 = arith.addf %13, %12 : vector<16x128xf32>
    %15 = arith.divf %13, %14 : vector<16x128xf32>
    %16 = arith.mulf %10, %15 : vector<16x128xf32>
    %17 = arith.truncf %16 : vector<16x128xf32> to vector<16x128xbf16>
    %c0_11 = arith.constant 0 : index
    %c0_12 = arith.constant 0 : index
    %18 = vector.load %arg6[%c0_11, %c0_12] : memref<128x16xbf16, #tpu.memory_space<vmem>>, vector<128x16xbf16>
    %cst_13 = arith.constant dense<0.000000e+00> : vector<16x16xf32>
    %19 = tpu.matmul %17, %18, %cst_13 {dimension_numbers = #tpu.dot_dimension_numbers<[1], [0], [0], [1], [0, 0, 1, 1], [], []>} : vector<16x128xbf16>, vector<128x16xbf16>, vector<16x16xf32> -> vector<16x16xf32>
    %c0_14 = arith.constant 0 : index
    %c0_15 = arith.constant 0 : index
    %20 = vector.load %arg7[%c0_14, %c0_15] : memref<1x16xf32, #tpu.memory_space<vmem>>, vector<1x16xf32>
    %21 = vector.broadcast %20 : vector<1x16xf32> to vector<16x16xf32>
    %22 = arith.addf %19, %21 : vector<16x16xf32>
    %23 = arith.addf %0, %22 : vector<16x16xf32>
    %c0_16 = arith.constant 0 : index
    %c0_17 = arith.constant 0 : index
    %24 = vector.load %arg8[%c0_16, %c0_17] : memref<16x16xf32, #tpu.memory_space<vmem>>, vector<16x16xf32>
    tpu.vector_store %arg8[%c0_16, %c0_17], %23 {strides = array<i32>} : memref<16x16xf32, #tpu.memory_space<vmem>>, vector<16x16xf32>,
    return
  }
  func.func @transform_0(%arg0: i32) -> (i32, i32) {
    %c0_i32 = arith.constant 0 : i32
    %c0_i32_0 = arith.constant 0 : i32
    return %arg0, %c0_i32 : i32, i32
  }
  func.func @transform_1(%arg0: i32) -> (i32, i32) {
    %c0_i32 = arith.constant 0 : i32
    %c0_i32_0 = arith.constant 0 : i32
    return %arg0, %c0_i32 : i32, i32
  }
  func.func @transform_2(%arg0: i32) -> (i32, i32) {
    %c0_i32 = arith.constant 0 : i32
    %c0_i32_0 = arith.constant 0 : i32
    %c0_i32_1 = arith.constant 0 : i32
    return %c0_i32, %c0_i32_0 : i32, i32
  }
  func.func @transform_3(%arg0: i32) -> (i32, i32) {
    %c0_i32 = arith.constant 0 : i32
    %c0_i32_0 = arith.constant 0 : i32
    %c0_i32_1 = arith.constant 0 : i32
    return %c0_i32, %c0_i32_0 : i32, i32
  }
  func.func @transform_4(%arg0: i32) -> (i32, i32) {
    %c0_i32 = arith.constant 0 : i32
    %c0_i32_0 = arith.constant 0 : i32
    %c0_i32_1 = arith.constant 0 : i32
    return %c0_i32, %c0_i32_0 : i32, i32
  }
  func.func @transform_5(%arg0: i32) -> (i32, i32) {
    %c0_i32 = arith.constant 0 : i32
    %c0_i32_0 = arith.constant 0 : i32
    %c0_i32_1 = arith.constant 0 : i32
    return %c0_i32, %c0_i32_0 : i32, i32
  }
  func.func @transform_6(%arg0: i32) -> (i32, i32) {
    %c0_i32 = arith.constant 0 : i32
    %c0_i32_0 = arith.constant 0 : i32
    %c0_i32_1 = arith.constant 0 : i32
    return %c0_i32, %c0_i32_0 : i32, i32
  }
  func.func @transform_7(%arg0: i32) -> (i32, i32) {
    %c0_i32 = arith.constant 0 : i32
    %c0_i32_0 = arith.constant 0 : i32
    return %arg0, %c0_i32 : i32, i32
  }
}

module attributes {stable_mosaic.version = 11 : i64} {
  func.func @_linear_kernel(%arg0: i32, %arg1: memref<16x16xbf16, #tpu.memory_space<vmem>>, %arg2: memref<16x8xbf16, #tpu.memory_space<vmem>>, %arg3: memref<1x8xf32, #tpu.memory_space<vmem>>, %arg4: memref<16x8xf32, #tpu.memory_space<vmem>>) attributes {dimension_semantics = [#tpu.dimension_semantics<parallel>], iteration_bounds = array<i64: 2>, scalar_prefetch = 0 : i64, scratch_operands = 0 : i64, tpu.core_type = #tpu.core_type<tc>, window_params = [{transform_indices = @transform_0, window_bounds = array<i64: 16, 16>}, {pipeline_mode = #tpu.pipeline_mode<synchronous>, transform_indices = @transform_1, window_bounds = array<i64: 16, 8>}, {pipeline_mode = #tpu.pipeline_mode<synchronous>, transform_indices = @transform_2, window_bounds = array<i64: 1, 8>}, {transform_indices = @transform_3, window_bounds = array<i64: 16, 8>}]} {
    %c0 = arith.constant 0 : index
    %c0_0 = arith.constant 0 : index
    %0 = vector.load %arg1[%c0, %c0_0] : memref<16x16xbf16, #tpu.memory_space<vmem>>, vector<16x16xbf16>
    %c0_1 = arith.constant 0 : index
    %c0_2 = arith.constant 0 : index
    %1 = vector.load %arg2[%c0_1, %c0_2] : memref<16x8xbf16, #tpu.memory_space<vmem>>, vector<16x8xbf16>
    %cst = arith.constant dense<0.000000e+00> : vector<16x8xf32>
    %2 = tpu.matmul %0, %1, %cst {dimension_numbers = #tpu.dot_dimension_numbers<[1], [0], [0], [1], [0, 0, 1, 1], [], []>} : vector<16x16xbf16>, vector<16x8xbf16>, vector<16x8xf32> -> vector<16x8xf32>
    %c0_3 = arith.constant 0 : index
    %c0_4 = arith.constant 0 : index
    %3 = vector.load %arg3[%c0_3, %c0_4] : memref<1x8xf32, #tpu.memory_space<vmem>>, vector<1x8xf32>
    %4 = vector.broadcast %3 : vector<1x8xf32> to vector<16x8xf32>
    %5 = arith.addf %2, %4 : vector<16x8xf32>
    %c0_5 = arith.constant 0 : index
    %c0_6 = arith.constant 0 : index
    %6 = vector.load %arg4[%c0_5, %c0_6] : memref<16x8xf32, #tpu.memory_space<vmem>>, vector<16x8xf32>
    tpu.vector_store %arg4[%c0_5, %c0_6], %5 {strides = array<i32>} : memref<16x8xf32, #tpu.memory_space<vmem>>, vector<16x8xf32>,
    return
  }
  func.func @transform_0(%arg0: i32) -> (i32, i32) {
    %c0_i32 = arith.constant 0 : i32
    %c0_i32_0 = arith.constant 0 : i32
    return %arg0, %c0_i32 : i32, i32
  }
  func.func @transform_1(%arg0: i32) -> (i32, i32) {
    %c0_i32 = arith.constant 0 : i32
    %c0_i32_0 = arith.constant 0 : i32
    %c0_i32_1 = arith.constant 0 : i32
    return %c0_i32, %c0_i32_0 : i32, i32
  }
  func.func @transform_2(%arg0: i32) -> (i32, i32) {
    %c0_i32 = arith.constant 0 : i32
    %c0_i32_0 = arith.constant 0 : i32
    %c0_i32_1 = arith.constant 0 : i32
    return %c0_i32, %c0_i32_0 : i32, i32
  }
  func.func @transform_3(%arg0: i32) -> (i32, i32) {
    %c0_i32 = arith.constant 0 : i32
    %c0_i32_0 = arith.constant 0 : i32
    return %arg0, %c0_i32 : i32, i32
  }
}

</mosaic_0001>

<bundles_post_ra>
// kernel: egnn_forward.6
= control target key start
LH: loop header
LB: loop body
LE: loop exit
PB: predicated region body
PF: predicated region fallthrough
CT: control target
= control target key end

     0   :  { %s796_s24 = smov 0   ;;  %s873_s0 = inlined_call_operand.vmem [shape: f32[32,16], index: 0, kind: input, shape index: {}]   ;;  %s874_s1 = inlined_call_operand.vmem [shape: bf16[32,32], index: 1, kind: input, shape index: {}]   ;;  %s875_s2 = inlined_call_operand.vmem [shape: bf16[16,128], index: 2, kind: input, shape index: {}]   ;;  %s876_s3 = inlined_call_operand.vmem [shape: bf16[32,128], index: 3, kind: input, shape index: {}]   ;;  %s877_s4 = inlined_call_operand.vmem [shape: f32[1,128], index: 4, kind: input, shape index: {}]   ;;  %s878_s5 = inlined_call_operand.vmem [shape: bf16[128,16], index: 5, kind: input, shape index: {}]   ;;  %s879_s6 = inlined_call_operand.vmem [shape: f32[1,16], index: 6, kind: input, shape index: {}]   ;;  %s880_s7 = inlined_call_operand.vmem [shape: f32[32,16], index: 7, kind: output, shape index: {}]  }
   0x1 LB: > { %s637_s25 = sadd.s32 4294967295, %s752_s24   ;;  %p641_p0 = scmp.ge.s32.totalorder %s752_s24, 1  ;;  %s752_s24 = sphi %s796_s24, %s17_s24  }
   0x2   : > { %p249_p1 = scmp.lt.s32.totalorder %s752_s24, 3 }
   0x4   : > { %p250_p2 = pnand %p641_p0, %p249_p1 }
   0x5   : > { %s642_s30 = sshll.u32 (!%p250_p2), %s637_s25, 1 }
   0x6   : > { %253 = sbr.rel (%p250_p2) target bundleno = 467 (0x1d3), region = 48  ;;  %p287_p3 = scmp.lt.s32.totalorder (!%p250_p2), %s642_s30, 3 }
   0xb   : > { %v726_v0 = vld [vmem:[%s876_s3 + $0x8] sm:$0xff]   ;;  %v754_v1 = vmov 0.0   ;;  %v727_v2 = vld [vmem:[%s876_s3] sm:$0xff]   ;;  %vm755_vm0 = vmmov 0   ;;  %s882_s30 = smov (!%p287_p3, %s642_s30), 3  ;;  %vm333_vm1 = vcmask 261120  }
   0xc   : > { %682 = vmatprep.subr.bf16.mxu0 %v754_v1  ;;  %696 = vmatprep.subr.bf16.mxu1 %v754_v1  ;;  %v729_v3 = vld [vmem:[%s875_s2] sm:$0xff]   ;;  %s643_s10 = sshll.u32 %s882_s30, 3  ;;  %s645_s11 = sshll.u32 %s882_s30, 2  ;;  %vm384_vm2 = vcmask 130048   ;;  %v730_v8 = vld [vmem:[%s878_s5 + $0x38] sm:$0xff]   ;;  %v731_v9 = vld [vmem:[%s878_s5 + $0x30] sm:$0xff]  }
   0xd   : > { %683 = vmatpush3.bf16.msra.mxu0 %v726_v0  ;;  %686 = vmatprep.mubr.msk.bf16.mxu0 %vm755_vm0, %v754_v1  ;;  %s296_s14 = scalar_lea.vmem %s874_s1, %s645_s11  ;;  %s290_s17 = scalar_lea.vmem %s873_s0, %s643_s10  ;;  %v732_v10 = vld [vmem:[%s878_s5 + $0x28] sm:$0xff]   ;;  %v733_v11 = vld [vmem:[%s878_s5 + $0x20] sm:$0xff]   ;;  %v734_v12 = vld [vmem:[%s878_s5 + $0x18] sm:$0xff]  }
   0xe   : > { %684 = vmatprep.subr.bf16.mxu0 %v754_v1  ;;  %712 = vmatprep.mubr.msk.bf16.mxu1 %vm755_vm0, %v754_v1  ;;  %v728_v4 = vld [vmem:[%s296_s14] sm:$0xff]   ;;  %v828_v6 = vld [vmem:[%s290_s17 + $0x8] sm:$0xff]  ;;  %v735_v13 = vld [vmem:[%s878_s5 + $0x10] sm:$0xff]   ;;  %s302_s20 = scalar_lea.vmem %s880_s7, %s643_s10 }
   0xf   : > { %v305_v5 = vld [vmem:[%s290_s17] sm:$0xff]  ;;  %697 = vmatpush3.bf16.msra.mxu1 %v730_v8  ;;  %v736_v14 = vld [vmem:[%s878_s5 + $0x8] sm:$0xff]  }
  0x10   : > { %v307_v7 = vpack.c.bf16 %v828_v6, %v305_v5  ;;  %698 = vmatprep.subr.bf16.mxu1 %v754_v1  ;;  %v737_v15 = vld [vmem:[%s878_s5] sm:$0xff]  }
  0x11   : > { %685 = vmatpush3.bf16.msra.mxu0 %v727_v2  ;;  %v654_v21 = vld [vmem:[%s877_s4] ss:$0 sm:$0xff] }
  0x12   : > { %690 = vmatprep.subr.bf16.mxu0 %v754_v1  ;;  %v657_v40 = vld [vmem:[%s879_s6] ss:$0 sm:$0xff] }
  0x13   : > { %699 = vmatpush3.bf16.msra.mxu1 %v731_v9 }
  0x14   : > { %687 = vmatmul.mubr.msk.bf16.vlgmr.msra.gmra.mxu0 %vm333_vm1, %v728_v4  ;;  %700 = vmatprep.subr.bf16.mxu1 %v754_v1 }
  0x15   : > { %691 = vmatpush3.bf16.msra.mxu0 %v729_v3  ;;  %692 = vmatprep.mubr.msk.bf16.mxu0 %vm755_vm0, %v754_v1 }
  0x17   : > { %701 = vmatpush3.bf16.msra.mxu1 %v732_v10 }
  0x18   : > { %702 = vmatprep.subr.bf16.mxu1 %v754_v1 }
  0x1b   : > { %703 = vmatpush3.bf16.msra.mxu1 %v733_v11 }
  0x1c   : > { %693 = vmatmul.mubr.msk.bf16.vlgmr.msra.gmra.mxu0 %vm384_vm2, %v307_v7  ;;  %704 = vmatprep.subr.bf16.mxu1 %v754_v1 }
  0x1f   : > { %705 = vmatpush3.bf16.msra.mxu1 %v734_v12 }
  0x20   : > { %706 = vmatprep.subr.bf16.mxu1 %v754_v1 }
  0x23   : > { %707 = vmatpush3.bf16.msra.mxu1 %v735_v13 }
  0x24   : > { %708 = vmatprep.subr.bf16.mxu1 %v754_v1 }
  0x27   : > { %709 = vmatpush3.bf16.msra.mxu1 %v736_v14 }
  0x28   : > { %710 = vmatprep.subr.bf16.mxu1 %v754_v1 }
  0x2b   : > { %711 = vmatpush3.bf16.msra.mxu1 %v737_v15 }
  0xd4   : > { %v371_v16 = vpop.f32.mrf.mxu0 }
  0xd6   : > { %v688_v17 = vpop.f32.mrf.mxu0 }
  0xd8   : > { %v374_v18 = vpop.f32.mrf.mxu0 }
  0xda   : > { %v689_v19 = vpop.f32.mrf.mxu0 }
  0xdc   : > { %v422_v20 = vpop.f32.mrf.mxu0 }
  0xdd   : > { %v423_v22 = vadd.f32 %v422_v20, %v371_v16 }
  0xde   : > { %v694_v23 = vpop.f32.mrf.mxu0 }
  0xdf   : > { %v436_v24 = vadd.f32 %v654_v21, %v423_v22 }
  0xe0   : > { %v425_v25 = vpop.f32.mrf.mxu0 }
  0xe1   : > { %v655_v26 = vmul.f32 -1.442695, %v436_v24  ;;  %v426_v27 = vadd.f32 %v425_v25, %v374_v18 }
  0xe2   : > { %v695_v28 = vpop.f32.mrf.mxu0 }
  0xe3   : > { %738 = vpow2.f32 %v655_v26  ;;  %v437_v29 = vadd.f32 %v654_v21, %v426_v27 }
  0xe5   : > { %v656_v30 = vmul.f32 -1.442695, %v437_v29 }
  0xe7   : > { %740 = vpow2.f32 %v656_v30 }
  0xf0   : > { %v739_v31 = vpop.eup %738 }
  0xf1   : > { %v444_v32 = vadd.f32 1.0, %v739_v31 }
  0xf3   : > { %742 = vrcp.f32 %v444_v32 }
  0xf4   : > { %v741_v33 = vpop.eup %740 }
  0xf5   : > { %v445_v34 = vadd.f32 1.0, %v741_v33 }
  0xf7   : > { %744 = vrcp.f32 %v445_v34 }
 0x100   : > { %v743_v35 = vpop.eup %742 }
 0x101   : > { %v450_v37 = vmul.f32 %v743_v35, %v436_v24 }
 0x104   : > { %v745_v36 = vpop.eup %744 }
 0x105   : > { %v451_v38 = vmul.f32 %v745_v36, %v437_v29 }
 0x107   : > { %v452_v39 = vpack.c.bf16 %v451_v38, %v450_v37 }
 0x109   : > { %713 = vmatmul.mubr.bf16.vlgmr.msra.gmra.mxu1 %v452_v39 }
 0x1c9   : > { %v558_v41 = vpop.f32.mrf.mxu1 }
 0x1ca   : > { %v559_v42 = vadd.f32 %v657_v40, %v558_v41 }
 0x1cb   : > { %v714_v43 = vpop.f32.mrf.mxu1 }
 0x1cc   : > { %v565_v44 = vadd.f32 %v559_v42, %v305_v5 }
 0x1cd   : > { %v561_v45 = vpop.f32.mrf.mxu1 }
 0x1ce   : > { %567 = vst.msk [vmem:[%s302_s20] sm:$0xff] %vm384_vm2, %v565_v44  ;;  %v562_v46 = vadd.f32 %v657_v40, %v561_v45 }
 0x1cf   : > { %v715_v47 = vpop.f32.mrf.mxu1 }
 0x1d0   : > { %v566_v48 = vadd.f32 %v562_v46, %v828_v6 }
 0x1d2   : > { %568 = vst.msk [vmem:[%s302_s20 + $0x8] sm:$0xff] %vm384_vm2, %v566_v48 }
 0x1d3 PF: > { %s17_s24 = sadd.s32 1, %s752_s24  }
 0x1d4   : > { %p14_p4 = scmp.ge.s32.totalorder %s17_s24, 4  }
 0x1d6   :  { %16 = sbr.rel (!%p14_p4) target bundleno = 1 (0x1), region = 81 }

// kernel: egnn_forward.5
= control target key start
LH: loop header
LB: loop body
LE: loop exit
PB: predicated region body
PF: predicated region fallthrough
CT: control target
= control target key end

     0   :  { %s1653_s23 = smov 0   ;;  %s1799_s0 = inlined_call_operand.vmem [shape: bf16[64,16], index: 0, kind: input, shape index: {}]   ;;  %s1800_s1 = inlined_call_operand.vmem [shape: bf16[64,16], index: 1, kind: input, shape index: {}]   ;;  %s1801_s2 = inlined_call_operand.vmem [shape: bf16[64,4], index: 2, kind: input, shape index: {}]   ;;  %s1802_s3 = inlined_call_operand.vmem [shape: f32[64,3], index: 3, kind: input, shape index: {}]   ;;  %s1803_s4 = inlined_call_operand.vmem [shape: f32[64,3], index: 4, kind: input, shape index: {}]   ;;  %s1804_s5 = inlined_call_operand.vmem [shape: bf16[16,128], index: 5, kind: input, shape index: {}]   ;;  %s1805_s6 = inlined_call_operand.vmem [shape: bf16[16,128], index: 6, kind: input, shape index: {}]   ;;  %s1806_s7 = inlined_call_operand.vmem [shape: bf16[4,128], index: 7, kind: input, shape index: {}]   ;;  %s1807_s8 = inlined_call_operand.vmem [shape: f32[1,128], index: 8, kind: input, shape index: {}]   ;;  %s1808_s9 = inlined_call_operand.vmem [shape: f32[1,128], index: 9, kind: input, shape index: {}]   ;;  %s1809_s10 = inlined_call_operand.vmem [shape: bf16[128,32], index: 10, kind: input, shape index: {}]   ;;  %s1810_s11 = inlined_call_operand.vmem [shape: f32[1,32], index: 11, kind: input, shape index: {}]   ;;  %s1811_s12 = inlined_call_operand.vmem [shape: bf16[32,128], index: 12, kind: input, shape index: {}]   ;;  %s1812_s13 = inlined_call_operand.vmem [shape: f32[1,128], index: 13, kind: input, shape index: {}]   ;;  %s1813_s14 = inlined_call_operand.vmem [shape: f32[1,128], index: 14, kind: input, shape index: {}]   ;;  %s1814_s15 = inlined_call_operand.<no memory space> [shape: f32[1], index: 15, kind: input, shape index: {}]   ;;  %s1815_s16 = inlined_call_operand.vmem [shape: f32[64,35], index: 16, kind: output, shape index: {}]  }
   0x1   :  { %1816 = sst [smem:[#allocation3_spill]] %s1799_s0 }
   0x2   :  { %21 = sst [smem:[#allocation2]] %s1814_s15 }
   0x3 LB: > { %s1349_s24 = sadd.s32 4294967295, %s1562_s23   ;;  %p1353_p0 = scmp.ge.s32.totalorder %s1562_s23, 1  ;;  %s1562_s23 = sphi %s1653_s23, %s27_s23  }
   0x4   : > { %p508_p1 = scmp.lt.s32.totalorder %s1562_s23, 3 }
   0x6   : > { %p509_p2 = pnand %p1353_p0, %p508_p1 }
   0x7   : > { %s1354_s15 = sshll.u32 (!%p509_p2), %s1349_s24, 2  ;;  %s1817_s17 = sld [smem:[#allocation3_spill]] (!%p509_p2) }
   0x8   : > { %512 = sbr.rel (%p509_p2) target bundleno = 1018 (0x3fa), region = 84  ;;  %p579_p3 = scmp.lt.s32.totalorder (!%p509_p2), %s1354_s15, 7 }
   0x9   : > { %s1564_s22 = smov (!%p509_p2), 32  }
   0xd   : > { %v1490_v0 = vld [vmem:[%s1805_s6] sm:$0xff]   ;;  %s1819_s15 = smov (!%p579_p3, %s1354_s15), 7  ;;  %vm672_vm0 = vcmask 130048   ;;  %vm821_vm1 = vcmask 1041408   ;;  %vm814_vm2 = vcmask 31744   ;;  %vm631_vm3 = vcmask 23552  }
   0xe   : > { %1434 = vmatprep.subr.bf16.mxu0 %v1490_v0  ;;  %v1492_v1 = vld [vmem:[%s1804_s5] sm:$0xff]   ;;  %s1355_s29 = sshll.u32 %s1819_s15, 2  ;;  %s1676_s25 = sshll.u32 %s1819_s15, 3  ;;  %v1498_v30 = vld [vmem:[%s1809_s10 + $0x38] sm:$0xff]   ;;  %v1499_v31 = vld [vmem:[%s1809_s10 + $0x30] sm:$0xff]   ;;  %vm1107_vm4 = vcmask 261120  }
   0xf   : > { %1435 = vmatpush3.bf16.msra.mxu0 %v1490_v0  ;;  %s582_s18 = scalar_lea.vmem %s1817_s17, %s1355_s29  ;;  %s588_s21 = scalar_lea.vmem %s1800_s1, %s1355_s29  ;;  %v803_v3 = vld [vmem:[%s1806_s7] sm:$0x3]  ;;  %1452 = vmatprep.subr.bf16.mxu1 %v1498_v30  ;;  %v1500_v32 = vld [vmem:[%s1809_s10 + $0x28] sm:$0xff]   ;;  %v1502_v34 = vld [vmem:[%s1809_s10 + $0x18] sm:$0xff]   ;;  %vm1240_vm5 = vcmask 285696  }
  0x10   : > { %1440 = vmatprep.subr.bf16.mxu0 %v1492_v1  ;;  %v1491_v2 = vld [vmem:[%s588_s21] sm:$0xff]   ;;  %v1493_v4 = vld [vmem:[%s588_s21 + $0x8] sm:$0xff]   ;;  %s1681_s28 = scalar_lea.vmem %s1801_s2, %s1355_s29  ;;  %s600_s15 = scalar_lea.vmem %s1802_s3, %s1676_s25  ;;  %v823_v15 = vsel %vm821_vm1, %v803_v3, 0  ;;  %1453 = vmatpush3.bf16.msra.mxu1 %v1498_v30  ;;  %v1503_v35 = vld [vmem:[%s1809_s10 + $0x10] sm:$0xff]  }
  0x11   : > { %1436 = vmatprep.mubr.msk.bf16.mxu0 %vm672_vm0, %v1491_v2  ;;  %v1494_v5 = vld [vmem:[%s582_s18] sm:$0xff]   ;;  %s606_s20 = scalar_lea.vmem %s1803_s4, %s1676_s25  ;;  %v1495_v6 = vld [vmem:[%s582_s18 + $0x8] sm:$0xff]   ;;  %v621_v9 = vld [vmem:[%s600_s15 + $0x10] sm:$0xff]  ;;  %1454 = vmatprep.subr.bf16.mxu1 %v1499_v31  ;;  %s1210_s21 = sld [smem:[#allocation2]] }
  0x12   : > { %1437 = vmatmul.mubr.msk.bf16.vlgmr.msra.gmra.mxu0 %vm672_vm0, %v1493_v4  ;;  %v1496_v7 = vld [vmem:[%s1681_s28] sm:$0xff]   ;;  %v617_v8 = vld [vmem:[%s606_s20 + $0x10] sm:$0xff]  ;;  %v618_v13 = vld [vmem:[%s606_s20 + $0x18] sm:$0xff]  ;;  %s612_s27 = scalar_lea.vmem %s1815_s16, %s1676_s25 }
  0x13   : > { %1441 = vmatpush3.bf16.msra.mxu0 %v1492_v1  ;;  %1442 = vmatprep.mubr.msk.bf16.mxu0 %vm672_vm0, %v1494_v5  ;;  %v615_v10 = vld [vmem:[%s606_s20] sm:$0xff]  ;;  %v1696_v11 = vsub.f32 %v617_v8, %v621_v9  ;;  %v622_v14 = vld [vmem:[%s600_s15 + $0x18] sm:$0xff]  ;;  %v616_v18 = vld [vmem:[%s606_s20 + $0x8] sm:$0xff] }
  0x14   : > { %1480 = vmatprep.subr.msk.bf16.mxu0 %vm821_vm1, %v803_v3  ;;  %v619_v12 = vld [vmem:[%s600_s15] sm:$0xff]  ;;  %v1701_v17 = vsub.f32 %v618_v13, %v622_v14  ;;  %v620_v19 = vld [vmem:[%s600_s15 + $0x8] sm:$0xff]  ;;  %1455 = vmatpush3.bf16.msra.mxu1 %v1499_v31 }
  0x15   : > { %v1699_v16 = vsub.f32 %v615_v10, %v619_v12  ;;  %v629_v20 = vmul.f32 %v1696_v11, %v1696_v11  ;;  %v1705_v21 = vsub.f32 %v616_v18, %v620_v19  ;;  %v1497_v29 = vld [vmem:[%s1681_s28 + $0x8] sm:$0xff]   ;;  %1456 = vmatprep.subr.bf16.mxu1 %v1500_v32  ;;  %v1501_v33 = vld [vmem:[%s1809_s10 + $0x20] sm:$0xff]  }
  0x16   : > { %v630_v23 = vmul.f32 %v1701_v17, %v1701_v17  ;;  %v1504_v36 = vld [vmem:[%s1809_s10 + $0x8] sm:$0xff]   ;;  %v1505_v37 = vld [vmem:[%s1809_s10] sm:$0xff]  }
  0x17   : > { %v627_v22 = vmul.f32 %v1699_v16, %v1699_v16  ;;  %v638_v24 = vsel %vm631_vm3, %v629_v20, 0.0  ;;  %v628_v25 = vmul.f32 %v1705_v21, %v1705_v21  ;;  %v1380_v47 = vld [vmem:[%s1807_s8] ss:$0 sm:$0xff] }
  0x18   : > { %639 = vadd.xlane.f32.xlu1 %v638_v24  ;;  %v641_v27 = vsel %vm631_vm3, %v630_v23, 0.0  ;;  %1457 = vmatpush3.bf16.msra.mxu1 %v1500_v32  ;;  %v1381_v57 = vld [vmem:[%s1808_s9] ss:$0 sm:$0xff] }
  0x19   : > { %v632_v26 = vsel %vm631_vm3, %v627_v22, 0.0  ;;  %v635_v28 = vsel %vm631_vm3, %v628_v25, 0.0  ;;  %1458 = vmatprep.subr.bf16.mxu1 %v1501_v33 }
  0x1a   : > { %1443 = vmatmul.mubr.msk.bf16.vlgmr.msra.gmra.mxu0 %vm672_vm0, %v1495_v6  ;;  %633 = vadd.xlane.f32.xlu0 %v632_v26 }
  0x1b   : > { %1447 = vmatpush3.bf16.msra.mxu0 %v823_v15  ;;  %1448 = vmatprep.mubr.msk.bf16.mxu0 %vm814_vm2, %v1496_v7 }
  0x1c   : > { %642 = vadd.xlane.f32.xlu1 %v641_v27  ;;  %1459 = vmatpush3.bf16.msra.mxu1 %v1501_v33 }
  0x1d   : > { %1460 = vmatprep.subr.bf16.mxu1 %v1502_v34 }
  0x1e   : > { %636 = vadd.xlane.f32.xlu0 %v635_v28 }
  0x20   : > { %1461 = vmatpush3.bf16.msra.mxu1 %v1502_v34 }
  0x21   : > { %1462 = vmatprep.subr.bf16.mxu1 %v1503_v35 }
  0x22   : > { %1449 = vmatmul.mubr.msk.bf16.vlgmr.msra.gmra.mxu0 %vm814_vm2, %v1497_v29 }
  0x24   : > { %1463 = vmatpush3.bf16.msra.mxu1 %v1503_v35 }
  0x25   : > { %1464 = vmatprep.subr.bf16.mxu1 %v1504_v36 }
  0x28   : > { %1465 = vmatpush3.bf16.msra.mxu1 %v1504_v36 }
  0x29   : > { %1466 = vmatprep.subr.bf16.mxu1 %v1505_v37 }
  0x2c   : > { %1467 = vmatpush3.bf16.msra.mxu1 %v1505_v37 }
  0xa1   : > { %v640_v44 = vpop.xlane.xlu1 %639 }
  0xa2   : > { %v887_v50 = vmul.f32 %v1380_v47, %v640_v44 }
  0xa3   : > { %v634_v45 = vpop.xlane.xlu0 %633 }
  0xa4   : > { %v885_v55 = vmul.f32 %v1380_v47, %v634_v45 }
  0xa5   : > { %v643_v52 = vpop.xlane.xlu1 %642 }
  0xa6   : > { %v888_v62 = vmul.f32 %v1380_v47, %v643_v52 }
  0xa7   : > { %v637_v56 = vpop.xlane.xlu0 %636 }
  0xa8   : > { %v886_v0 = vmul.f32 %v1380_v47, %v637_v56 }
  0xd2   : > { %v1438_v38 = vpop.f32.mrf.mxu0 }
  0xd4   : > { %v713_v39 = vpop.f32.mrf.mxu0 }
  0xd6   : > { %v1439_v40 = vpop.f32.mrf.mxu0 }
  0xd8   : > { %v716_v41 = vpop.f32.mrf.mxu0 }
  0xda   : > { %v1444_v42 = vpop.f32.mrf.mxu0 }
  0xdb   : > { %v793_v49 = vadd.f32 %v1444_v42, %v1438_v38  ;;  %v1506_v38 = vld [vmem:[%s1811_s12 + $0x8] sm:$0xff]  }
  0xdc   : > { %v784_v43 = vpop.f32.mrf.mxu0  ;;  %1472 = vmatprep.subr.bf16.mxu0 %v1506_v38 }
  0xdd   : > { %v785_v53 = vadd.f32 %v784_v43, %v713_v39  ;;  %1473 = vmatpush3.bf16.msra.mxu0 %v1506_v38  ;;  %v1507_v39 = vld [vmem:[%s1811_s12] sm:$0xff]  }
  0xde   : > { %v1445_v46 = vpop.f32.mrf.mxu0  ;;  %1474 = vmatprep.subr.bf16.mxu0 %v1507_v39 }
  0xdf   : > { %v796_v59 = vadd.f32 %v1445_v46, %v1439_v40  ;;  %v1386_v40 = vld [vmem:[%s1810_s11] ss:$0 sm:$0xff] }
  0xe0   : > { %v787_v48 = vpop.f32.mrf.mxu0 }
  0xe1   : > { %v788_v1 = vadd.f32 %v787_v48, %v716_v41  ;;  %1475 = vmatpush3.bf16.msra.mxu0 %v1507_v39 }
  0xe2   : > { %v1450_v51 = vpop.f32.mrf.mxu0 }
  0xe3   : > { %v876_v54 = vadd.f32 %v1450_v51, %v793_v49 }
  0xe4   : > { %v859_v58 = vpop.f32.mrf.mxu0 }
  0xe5   : > { %v891_v60 = vadd.f32 %v887_v50, %v876_v54  ;;  %v874_v61 = vadd.f32 %v859_v58, %v785_v53 }
  0xe6   : > { %v1451_v63 = vpop.f32.mrf.mxu0 }
  0xe7   : > { %v902_v2 = vadd.f32 %v1381_v57, %v891_v60  ;;  %v889_v3 = vadd.f32 %v885_v55, %v874_v61  ;;  %v877_v4 = vadd.f32 %v1451_v63, %v796_v59 }
  0xe8   : > { %v862_v5 = vpop.f32.mrf.mxu0 }
  0xe9   : > { %v1384_v6 = vmul.f32 -1.442695, %v902_v2  ;;  %v892_v7 = vadd.f32 %v888_v62, %v877_v4  ;;  %v875_v8 = vadd.f32 %v862_v5, %v788_v1  ;;  %v900_v9 = vadd.f32 %v1381_v57, %v889_v3 }
  0xeb   : > { %v903_v10 = vadd.f32 %v1381_v57, %v892_v7  ;;  %v890_v12 = vadd.f32 %v886_v0, %v875_v8  ;;  %v1382_v13 = vmul.f32 -1.442695, %v900_v9  ;;  %1508 = vpow2.f32 %v1384_v6  ;;  %v1399_v7 = vld [vmem:[%s1812_s13] ss:$0 sm:$0xff] }
  0xed   : > { %v1385_v14 = vmul.f32 -1.442695, %v903_v10  ;;  %v901_v15 = vadd.f32 %v1381_v57, %v890_v12  ;;  %1510 = vpow2.f32 %v1382_v13 }
  0xef   : > { %1512 = vpow2.f32 %v1385_v14  ;;  %v1383_v18 = vmul.f32 -1.442695, %v901_v15 }
  0xf1   : > { %1514 = vpow2.f32 %v1383_v18 }
  0xf8   : > { %v1509_v19 = vpop.eup %1508 }
  0xf9   : > { %v918_v24 = vadd.f32 1.0, %v1509_v19 }
  0xfa   : > { %v1511_v20 = vpop.eup %1510 }
  0xfb   : > { %v916_v22 = vadd.f32 1.0, %v1511_v20 }
  0xfc   : > { %v1513_v23 = vpop.eup %1512 }
  0xfd   : > { %v919_v25 = vadd.f32 1.0, %v1513_v23  ;;  %1516 = vrcp.f32 %v916_v22 }
  0xfe   : > { %v1515_v26 = vpop.eup %1514 }
  0xff   : > { %1518 = vrcp.f32 %v919_v25  ;;  %v917_v27 = vadd.f32 1.0, %v1515_v26 }
 0x100   : > { %1520 = vrcp.f32 %v918_v24 }
 0x101   : > { %1522 = vrcp.f32 %v917_v27 }
 0x10a   : > { %v1517_v28 = vpop.eup %1516 }
 0x10b   : > { %v928_v33 = vmul.f32 %v1517_v28, %v900_v9 }
 0x10c   : > { %v1519_v29 = vpop.eup %1518 }
 0x10d   : > { %v1521_v30 = vpop.eup %1520  ;;  %v931_v32 = vmul.f32 %v1519_v29, %v903_v10 }
 0x10e   : > { %v1523_v31 = vpop.eup %1522  ;;  %v930_v35 = vmul.f32 %v1521_v30, %v902_v2 }
 0x10f   : > { %v929_v34 = vmul.f32 %v1523_v31, %v901_v15 }
 0x110   : > { %v933_v37 = vpack.c.bf16 %v931_v32, %v930_v35  ;;  %v1408_v35 = vld [vmem:[%s1813_s14] ss:$0 sm:$0xff] }
 0x111   : > { %v932_v36 = vpack.c.bf16 %v929_v34, %v928_v33 }
 0x113   : > { %1468 = vmatprep.mubr.bf16.mxu1 %v932_v36 }
 0x114   : > { %1469 = vmatmul.mubr.bf16.vlgmr.msra.gmra.mxu1 %v933_v37 }
 0x1d4   : > { %v1470_v41 = vpop.f32.mrf.mxu1 }
 0x1d5   : > { %v1048_v42 = vadd.f32 %v1470_v41, %v1386_v40 }
 0x1d6   : > { %v1039_v43 = vpop.f32.mrf.mxu1 }
 0x1d7   : > { %v1397_v44 = vmul.f32 -1.442695, %v1048_v42  ;;  %v1040_v45 = vadd.f32 %v1386_v40, %v1039_v43 }
 0x1d8   : > { %v1471_v46 = vpop.f32.mrf.mxu1 }
 0x1d9   : > { %v1395_v47 = vmul.f32 -1.442695, %v1040_v45  ;;  %v1051_v48 = vadd.f32 %v1471_v46, %v1386_v40  ;;  %1524 = vpow2.f32 %v1397_v44 }
 0x1da   : > { %v1042_v49 = vpop.f32.mrf.mxu1 }
 0x1db   : > { %1526 = vpow2.f32 %v1395_v47  ;;  %v1398_v50 = vmul.f32 -1.442695, %v1051_v48  ;;  %v1043_v51 = vadd.f32 %v1386_v40, %v1042_v49 }
 0x1dd   : > { %1528 = vpow2.f32 %v1398_v50  ;;  %v1396_v52 = vmul.f32 -1.442695, %v1043_v51 }
 0x1df   : > { %1530 = vpow2.f32 %v1396_v52 }
 0x1e6   : > { %v1525_v53 = vpop.eup %1524 }
 0x1e7   : > { %v1068_v57 = vadd.f32 1.0, %v1525_v53 }
 0x1e8   : > { %v1527_v54 = vpop.eup %1526 }
 0x1e9   : > { %v1066_v55 = vadd.f32 1.0, %v1527_v54 }
 0x1ea   : > { %v1529_v56 = vpop.eup %1528 }
 0x1eb   : > { %v1069_v58 = vadd.f32 1.0, %v1529_v56  ;;  %1532 = vrcp.f32 %v1066_v55 }
 0x1ec   : > { %v1531_v59 = vpop.eup %1530 }
 0x1ed   : > { %1534 = vrcp.f32 %v1069_v58  ;;  %v1067_v60 = vadd.f32 1.0, %v1531_v59 }
 0x1ee   : > { %1536 = vrcp.f32 %v1068_v57 }
 0x1ef   : > { %1538 = vrcp.f32 %v1067_v60 }
 0x1f8   : > { %v1533_v61 = vpop.eup %1532 }
 0x1f9   : > { %v1762_v2 = vmul.f32 %v1533_v61, %v1040_v45  ;;  %v1211_v45 = vstv %s1210_s21 }
 0x1fa   : > { %v1535_v62 = vpop.eup %1534 }
 0x1fb   : > { %v1537_v63 = vpop.eup %1536  ;;  %v1760_v1 = vmul.f32 %v1535_v62, %v1051_v48 }
 0x1fc   : > { %v1539_v0 = vpop.eup %1538  ;;  %v1766_v4 = vmul.f32 %v1537_v63, %v1048_v42 }
 0x1fd   : > { %v1764_v3 = vmul.f32 %v1539_v0, %v1043_v51 }
 0x1fe   : > { %v1083_v6 = vpack.c.bf16 %v1760_v1, %v1766_v4 }
 0x1ff   : > { %v1082_v5 = vpack.c.bf16 %v1764_v3, %v1762_v2 }
 0x201   : > { %1476 = vmatprep.mubr.msk.bf16.mxu0 %vm1107_vm4, %v1082_v5 }
 0x202   : > { %1477 = vmatmul.mubr.msk.bf16.vlgmr.msra.gmra.mxu0 %vm1107_vm4, %v1083_v6 }
 0x2c2   : > { %v1478_v8 = vpop.f32.mrf.mxu0 }
 0x2c3   : > { %v1157_v9 = vadd.f32 %v1478_v8, %v1399_v7 }
 0x2c4   : > { %v1148_v10 = vpop.f32.mrf.mxu0 }
 0x2c5   : > { %v1406_v12 = vmul.f32 -1.442695, %v1157_v9  ;;  %v1149_v13 = vadd.f32 %v1399_v7, %v1148_v10 }
 0x2c6   : > { %v1479_v14 = vpop.f32.mrf.mxu0 }
 0x2c7   : > { %1540 = vpow2.f32 %v1406_v12  ;;  %v1404_v15 = vmul.f32 -1.442695, %v1149_v13  ;;  %v1160_v18 = vadd.f32 %v1479_v14, %v1399_v7 }
 0x2c8   : > { %v1151_v19 = vpop.f32.mrf.mxu0 }
 0x2c9   : > { %1542 = vpow2.f32 %v1404_v15  ;;  %v1407_v20 = vmul.f32 -1.442695, %v1160_v18  ;;  %v1152_v22 = vadd.f32 %v1399_v7, %v1151_v19 }
 0x2cb   : > { %1544 = vpow2.f32 %v1407_v20  ;;  %v1405_v23 = vmul.f32 -1.442695, %v1152_v22 }
 0x2cd   : > { %1546 = vpow2.f32 %v1405_v23 }
 0x2d4   : > { %v1541_v24 = vpop.eup %1540 }
 0x2d5   : > { %v1177_v25 = vadd.f32 1.0, %v1541_v24 }
 0x2d6   : > { %v1543_v26 = vpop.eup %1542 }
 0x2d7   : > { %v1175_v27 = vadd.f32 1.0, %v1543_v26  ;;  %1548 = vrcp.f32 %v1177_v25 }
 0x2d8   : > { %v1545_v28 = vpop.eup %1544 }
 0x2d9   : > { %1550 = vrcp.f32 %v1175_v27  ;;  %v1178_v29 = vadd.f32 1.0, %v1545_v28 }
 0x2da   : > { %v1547_v30 = vpop.eup %1546 }
 0x2db   : > { %v1176_v31 = vadd.f32 1.0, %v1547_v30  ;;  %1552 = vrcp.f32 %v1178_v29 }
 0x2dd   : > { %1554 = vrcp.f32 %v1176_v31 }
 0x2e4   : > { %v1549_v32 = vpop.eup %1548 }
 0x2e5   : > { %v1189_v37 = vmul.f32 %v1549_v32, %v1157_v9 }
 0x2e6   : > { %v1551_v33 = vpop.eup %1550 }
 0x2e7   : > { %v1187_v34 = vmul.f32 %v1551_v33, %v1149_v13  ;;  %v1200_v43 = vmul.f32 %v1408_v35, %v1189_v37 }
 0x2e8   : > { %v1553_v36 = vpop.eup %1552 }
 0x2e9   : > { %v1198_v38 = vmul.f32 %v1408_v35, %v1187_v34  ;;  %v1190_v41 = vmul.f32 %v1553_v36, %v1160_v18 }
 0x2ea   : > { %v1555_v39 = vpop.eup %1554 }
 0x2eb   : > { %v1188_v40 = vmul.f32 %v1555_v39, %v1152_v22  ;;  %1202 = vadd.xlane.f32.xlu0 %v1198_v38  ;;  %v1201_v44 = vmul.f32 %v1408_v35, %v1190_v41 }
 0x2ed   : > { %v1199_v42 = vmul.f32 %v1408_v35, %v1188_v40 }
 0x2ef   : > { %1204 = vadd.xlane.f32.xlu1 %v1199_v42  ;;  %1206 = vadd.xlane.f32.xlu0 %v1200_v43 }
 0x2f3   : > { %1208 = vadd.xlane.f32.xlu1 %v1201_v44 }
 0x374   : > { %v1203_v46 = vpop.xlane.xlu0 %1202 }
 0x375   : > { %v1212_v47 = vadd.f32 %v1211_v45, %v1203_v46 }
 0x377   : > { %v1216_v48 = vmul.f32 %v1212_v47, %v1699_v16 }
 0x378   : > { %v1205_v49 = vpop.xlane.xlu1 %1204  ;;  %v1207_v50 = vpop.xlane.xlu0 %1206 }
 0x379   : > { %v1214_v51 = vadd.f32 %v1211_v45, %v1207_v50  ;;  %1224 = vrot.lane.b32.xlu0 %v1216_v48, %s1564_s22  ;;  %v1213_v52 = vadd.f32 %v1211_v45, %v1205_v49 }
 0x37b   : > { %v1218_v53 = vmul.f32 %v1214_v51, %v1696_v11  ;;  %v1217_v55 = vmul.f32 %v1213_v52, %v1705_v21 }
 0x37c   : > { %v1209_v54 = vpop.xlane.xlu1 %1208 }
 0x37d   : > { %1228 = vrot.lane.b32.xlu1 %v1218_v53, %s1564_s22  ;;  %v1215_v56 = vadd.f32 %v1211_v45, %v1209_v54 }
 0x37f   : > { %v1219_v57 = vmul.f32 %v1215_v56, %v1701_v17 }
 0x381   : > { %1226 = vrot.lane.b32.xlu1 %v1217_v55, %s1564_s22 }
 0x385   : > { %1230 = vrot.lane.b32.xlu1 %v1219_v57, %s1564_s22 }
 0x3eb   : > { %v1225_v16 = vpop.permute.xlu0 %1224 }
 0x3ec   : > { %v1236_v58 = vsel %vm1107_vm4, %v1762_v2, %v1225_v16 }
 0x3ed   : > { %1241 = vst.msk [vmem:[%s612_s27] sm:$0xff] %vm1240_vm5, %v1236_v58 }
 0x3ef   : > { %v1229_v11 = vpop.permute.xlu1 %1228 }
 0x3f0   : > { %v1238_v60 = vsel %vm1107_vm4, %v1766_v4, %v1229_v11 }
 0x3f1   : > { %1243 = vst.msk [vmem:[%s612_s27 + $0x10] sm:$0xff] %vm1240_vm5, %v1238_v60 }
 0x3f3   : > { %v1227_v59 = vpop.permute.xlu1 %1226 }
 0x3f4   : > { %v1237_v21 = vsel %vm1107_vm4, %v1764_v3, %v1227_v59 }
 0x3f5   : > { %1242 = vst.msk [vmem:[%s612_s27 + $0x8] sm:$0xff] %vm1240_vm5, %v1237_v21 }
 0x3f7   : > { %v1231_v17 = vpop.permute.xlu1 %1230 }
 0x3f8   : > { %v1239_v61 = vsel %vm1107_vm4, %v1760_v1, %v1231_v17 }
 0x3f9   : > { %1244 = vst.msk [vmem:[%s612_s27 + $0x18] sm:$0xff] %vm1240_vm5, %v1239_v61 }
 0x3fa PF: > { %s27_s23 = sadd.s32 1, %s1562_s23  }
 0x3fb   : > { %p24_p4 = scmp.ge.s32.totalorder %s27_s23, 4  }
 0x3fd   :  { %26 = sbr.rel (!%p24_p4) target bundleno = 3 (0x3), region = 126 }

// kernel: egnn_forward.9
= control target key start
LH: loop header
LB: loop body
LE: loop exit
PB: predicated region body
PF: predicated region fallthrough
CT: control target
= control target key end

     0   :  { %s366_s12 = smov 0   ;;  %s389_s0 = inlined_call_operand.vmem [shape: bf16[32,16], index: 0, kind: input, shape index: {}]   ;;  %s390_s1 = inlined_call_operand.vmem [shape: bf16[16,8], index: 1, kind: input, shape index: {}]   ;;  %s391_s2 = inlined_call_operand.vmem [shape: f32[1,8], index: 2, kind: input, shape index: {}]   ;;  %s392_s3 = inlined_call_operand.vmem [shape: f32[32,8], index: 3, kind: output, shape index: {}]  }
   0x1 LB: > { %s301_s13 = sadd.s32 4294967295, %s342_s12   ;;  %p305_p0 = scmp.ge.s32.totalorder %s342_s12, 1  ;;  %s342_s12 = sphi %s366_s12, %s13_s12  }
   0x2   : > { %p138_p1 = scmp.lt.s32.totalorder %s342_s12, 3 }
   0x4   : > { %p139_p2 = pnand %p305_p0, %p138_p1 }
   0x5   : > { %s306_s16 = sshll.u32 (!%p139_p2), %s301_s13, 1 }
   0x6   : > { %142 = sbr.rel (%p139_p2) target bundleno = 216 (0xd8), region = 32  ;;  %p163_p3 = scmp.lt.s32.totalorder (!%p139_p2), %s306_s16, 3 }
   0xb   : > { %v334_v0 = vld [vmem:[%s390_s1] sm:$0xff]   ;;  %v344_v1 = vmov 0.0   ;;  %vm345_vm0 = vmmov 0   ;;  %s394_s16 = smov (!%p163_p3, %s306_s16), 3  ;;  %vm197_vm1 = vcmask 130048   ;;  %vm242_vm2 = vcmask 64512  }
   0xc   : > { %318 = vmatprep.subr.bf16.mxu0 %v344_v1  ;;  %320 = vmatprep.mubr.msk.bf16.mxu0 %vm345_vm0, %v344_v1  ;;  %s307_s17 = sshll.u32 %s394_s16, 2  ;;  %s309_s21 = sshll.u32 %s394_s16, 3  ;;  %v310_v3 = vld [vmem:[%s391_s2] ss:$0 sm:$0xff] }
   0xd   : > { %319 = vmatpush3.bf16.msra.mxu0 %v334_v0  ;;  %s166_s20 = scalar_lea.vmem %s389_s0, %s307_s17  ;;  %s172_s26 = scalar_lea.vmem %s392_s3, %s309_s21 }
   0xe   : > { %v335_v2 = vld [vmem:[%s166_s20] sm:$0xff]  }
  0x10   : > { %321 = vmatmul.mubr.msk.bf16.vlgmr.msra.gmra.mxu0 %vm197_vm1, %v335_v2 }
  0xd0   : > { %v235_v4 = vpop.f32.mrf.mxu0 }
  0xd1   : > { %v236_v5 = vadd.f32 %v310_v3, %v235_v4 }
  0xd2   : > { %v322_v6 = vpop.f32.mrf.mxu0 }
  0xd3   : > { %243 = vst.msk [vmem:[%s172_s26] sm:$0xff] %vm242_vm2, %v236_v5 }
  0xd4   : > { %v238_v7 = vpop.f32.mrf.mxu0 }
  0xd5   : > { %v239_v8 = vadd.f32 %v310_v3, %v238_v7 }
  0xd6   : > { %v323_v9 = vpop.f32.mrf.mxu0 }
  0xd7   : > { %244 = vst.msk [vmem:[%s172_s26 + $0x8] sm:$0xff] %vm242_vm2, %v239_v8 }
  0xd8 PF: > { %s13_s12 = sadd.s32 1, %s342_s12  }
  0xd9   : > { %p10_p4 = scmp.ge.s32.totalorder %s13_s12, 4  }
  0xdb   :  { %12 = sbr.rel (!%p10_p4) target bundleno = 1 (0x1), region = 62 }

</bundles_post_ra>
